<compile_context>
chip_gen: v7x
topology: tpu7x:2x2x1
jax: 0.10.0
libtpu: 0.0.40
codegen_flags: <defaults>
</compile_context>

<pallas_src>
import functools

import numpy as np
import jax
import jax.numpy as jnp
from jax.experimental import pallas as pl
from jax.experimental.pallas import tpu as pltpu

# ---- static config (the concrete `params` dict fed to MOAVEncoder) ----------
B = 2               # batch
C0 = 4              # charset_length (Conv1d in_channels)
L0 = 16             # max_length     (Conv1d spatial length)
K1, O1 = 5, 8       # conv layer 1: kernel_size, out_channels (batch_norm, ReLU)
K2, O2 = 5, 8       # conv layer 2: kernel_size, out_channels (batch_norm, ReLU)
L1 = L0 - K1 + 1    # 12   valid conv1 outputs per sample
L2 = L1 - K2 + 1    # 8    valid conv2 outputs per sample
H = 32              # dense layer 'dimension' (dropout + batch_norm + ReLU)
LAT = 8             # latent_dimension (sampling head: Linear(H, 2*LAT) + Tanh)
BN_EPS = 1e-5       # PyTorch BatchNorm1d default eps
EPS = 1e-8          # forward() eps
BT_MAX = 128        # max samples per grid step (batch tiles shard across cores)

# packed constant-blob layout: every block starts at an 8-aligned row offset
W_COLS = 32
W1_OFF = 0                       # K1 blocks of (C0, O1), 8 rows each  [  0,  40)
W2_OFF = W1_OFF + 8 * K1         # K2 blocks of (O1, O2), 8 rows each  [ 40,  80)
WD_OFF = W2_OFF + 8 * K2         # L2 blocks of (O2, H),  8 rows each  [ 80, 144)
WS_OFF = WD_OFF + 8 * L2         # (H, 2*LAT) head weight              [144, 176)
V_OFF = WS_OFF + H               # BN scale/shift rows + head bias     [176, 184)
W_ROWS = V_OFF + 8


def moav_encoder_kernel(x_ref, noise_ref, w_ref, out_ref, *, bt):
    n = bt * L0                                          # rows = sample*L0 + pos

    # folded-BN scale/shift + head bias: one small load, value-row slices after
    v = w_ref[V_OFF:V_OFF + 8, :]                        # (8, 32)
    s1, t1 = v[0:1, :O1], v[1:2, :O1]
    s2, t2 = v[2:3, :O2], v[3:4, :O2]
    sd, td = v[4:5, :H], v[5:6, :H]
    bs = v[6:7, :2 * LAT]

    # Raw NCW input -> (sample*pos, channel) rows, done in-kernel (2 tiny vregs)
    # so no wrapper-side XLA launch / HBM round trip is needed.  8 zero rows are
    # appended so the shifted conv windows below stay in-bounds; out-of-window
    # rows only ever feed junk output rows (pos >= L1 / L2), never valid ones.
    xv = x_ref[...]                                      # (bt, C0, L0)
    x2p = jnp.concatenate([xv[b].T for b in range(bt)]
                          + [jnp.zeros((8, C0), jnp.float32)], axis=0)

    # conv1 (+ folded BN) + ReLU: K1 accumulated (n, C0) @ (C0, O1) MXU matmuls
    # over sublane-shifted windows (replaces the old lane-axis im2col concat).
    h1 = jnp.dot(x2p[0:n, :], w_ref[W1_OFF:W1_OFF + C0, :O1],
                 preferred_element_type=jnp.float32)
    for k in range(1, K1):
        h1 = h1 + jnp.dot(x2p[k:k + n, :],
                          w_ref[W1_OFF + 8 * k:W1_OFF + 8 * k + C0, :O1],
                          preferred_element_type=jnp.float32)
    h1 = jnp.maximum(h1 * s1 + t1, 0.0)                  # (n, O1); pos>=L1 junk

    # conv2 (+ folded BN) + ReLU: same accumulated-matmul scheme.
    h1p = jnp.concatenate([h1, jnp.zeros((8, O1), jnp.float32)], axis=0)
    h2 = jnp.dot(h1p[0:n, :], w_ref[W2_OFF:W2_OFF + O1, :O2],
                 preferred_element_type=jnp.float32)
    for k in range(1, K2):
        h2 = h2 + jnp.dot(h1p[k:k + n, :],
                          w_ref[W2_OFF + 8 * k:W2_OFF + 8 * k + O1, :O2],
                          preferred_element_type=jnp.float32)
    h2 = jnp.maximum(h2 * s2 + t2, 0.0)                  # (n, O2); pos>=L2 junk

    # dense (+ Dropout identity in eval, folded BN) + ReLU.  The torch
    # `.view(B,-1)` lane-flatten is avoided entirely: the dense weight was
    # pre-split into L2 per-position (O2, H) blocks, accumulated on the MXU.
    h2b = h2.reshape(bt, L0, O2)                         # 8-aligned leading split
    hd = jnp.dot(h2b[:, 0, :], w_ref[WD_OFF:WD_OFF + O2, :H],
                 preferred_element_type=jnp.float32)
    for l in range(1, L2):
        hd = hd + jnp.dot(h2b[:, l, :],
                          w_ref[WD_OFF + 8 * l:WD_OFF + 8 * l + O2, :H],
                          preferred_element_type=jnp.float32)
    hd = jnp.maximum(hd * sd + td, 0.0)                  # (bt, H)

    # sampling head: Linear -> Tanh -> chunk -> softplus -> reparameterised z
    s = jnp.tanh(jnp.dot(hd, w_ref[WS_OFF:WS_OFF + H, :2 * LAT],
                         preferred_element_type=jnp.float32) + bs)
    z_mean = s[:, :LAT]
    z_log_var = s[:, LAT:2 * LAT]
    # softplus(x) = log(1+exp(x)) is overflow-safe because x = tanh(.) in [-1,1]
    std = jnp.log(1.0 + jnp.exp(z_log_var)) + EPS
    z = z_mean + std * noise_ref[...]                    # diag-MVN rsample

    # three stores at static lane offsets (no output lane-axis concatenates)
    out_ref[:, 0:LAT] = z
    out_ref[:, LAT:2 * LAT] = z_mean
    out_ref[:, 2 * LAT:3 * LAT] = std


def prepare_params(p):
    """One-time (off the hot path) BN folding, weight permutation and packing
    of ALL constants into a single (W_ROWS, 32) f32 blob -> one weight DMA."""
    pn = {k: np.asarray(v, dtype=np.float32) for k, v in p.items()}

    def fold_bn(bias, gamma, beta, mean, var):
        scale = gamma / np.sqrt(var + BN_EPS)
        shift = (bias - mean) * scale + beta
        return scale.astype(np.float32), shift.astype(np.float32)

    s1, t1 = fold_bn(pn['b1'], pn['g1'], pn['be1'], pn['m1'], pn['v1'])
    s2, t2 = fold_bn(pn['b2'], pn['g2'], pn['be2'], pn['m2'], pn['v2'])
    sd, td = fold_bn(pn['bd'], pn['gd'], pn['bed'], pn['md'], pn['vd'])

    wblob = np.zeros((W_ROWS, W_COLS), np.float32)
    # conv weights (O,C,K) -> per-tap (C,O) blocks at 8-aligned row offsets
    w1p = np.transpose(pn['w1'], (2, 1, 0))                   # (K1, C0, O1)
    for k in range(K1):
        wblob[W1_OFF + 8 * k:W1_OFF + 8 * k + C0, :O1] = w1p[k]
    w2p = np.transpose(pn['w2'], (2, 1, 0))                   # (K2, O1, O2)
    for k in range(K2):
        wblob[W2_OFF + 8 * k:W2_OFF + 8 * k + O1, :O2] = w2p[k]
    # dense weight (H, O2*L2), torch .view order (o*L2+l) -> per-position (O2,H)
    wdp = np.transpose(pn['wd'].reshape(H, O2, L2), (2, 1, 0))  # (L2, O2, H)
    for l in range(L2):
        wblob[WD_OFF + 8 * l:WD_OFF + 8 * l + O2, :H] = wdp[l]
    wblob[WS_OFF:WS_OFF + H, :2 * LAT] = pn['ws'].T             # (H, 2*LAT)
    # folded-BN scale/shift rows + head bias
    wblob[V_OFF + 0, :O1] = s1
    wblob[V_OFF + 1, :O1] = t1
    wblob[V_OFF + 2, :O2] = s2
    wblob[V_OFF + 3, :O2] = t2
    wblob[V_OFF + 4, :H] = sd
    wblob[V_OFF + 5, :H] = td
    wblob[V_OFF + 6, :2 * LAT] = pn['bs']
    return jnp.asarray(wblob)


@jax.jit
def moav_encoder_forward(x, noise, wblob):
    """Hot path: ONE pallas_call, 3 input DMAs, no pre-kernel XLA ops.

    When many samples are stacked along the leading axis, they are processed in
    batch tiles of BT_MAX rows with a "parallel" grid axis (shards across the
    two TensorCores on v7x); the weight blob stays resident (block 0 always)."""
    bn = x.shape[0]
    bt = bn if bn <= BT_MAX else BT_MAX
    assert bn % bt == 0
    out = pl.pallas_call(
        functools.partial(moav_encoder_kernel, bt=bt),
        out_shape=jax.ShapeDtypeStruct((bn, 3 * LAT), jnp.float32),
        grid=(bn // bt,),
        in_specs=[
            pl.BlockSpec((bt, C0, L0), lambda i: (i, 0, 0)),
            pl.BlockSpec((bt, LAT), lambda i: (i, 0)),
            pl.BlockSpec((W_ROWS, W_COLS), lambda i: (0, 0)),   # resident weights
        ],
        out_specs=pl.BlockSpec((bt, 3 * LAT), lambda i: (i, 0)),
        compiler_params=pltpu.CompilerParams(
            dimension_semantics=("parallel",)),
    )(x, noise, wblob)
    return out[:, :LAT], out[:, LAT:2 * LAT], out[:, 2 * LAT:]


def init_params(key):
    ks = jax.random.split(key, 20)
    nrm = lambda k, shape, sc=0.1: (sc * jax.random.normal(k, shape)).astype(jnp.float32)
    p = {}
    # conv1 + BN1
    p['w1'] = nrm(ks[0], (O1, C0, K1)); p['b1'] = nrm(ks[1], (O1,))
    p['g1'] = 1.0 + nrm(ks[2], (O1,));  p['be1'] = nrm(ks[3], (O1,))
    p['m1'] = nrm(ks[4], (O1,));        p['v1'] = 1.0 + jnp.abs(nrm(ks[5], (O1,)))
    # conv2 + BN2
    p['w2'] = nrm(ks[6], (O2, O1, K2)); p['b2'] = nrm(ks[7], (O2,))
    p['g2'] = 1.0 + nrm(ks[8], (O2,));  p['be2'] = nrm(ks[9], (O2,))
    p['m2'] = nrm(ks[10], (O2,));       p['v2'] = 1.0 + jnp.abs(nrm(ks[11], (O2,)))
    # dense + BN
    p['wd'] = nrm(ks[12], (H, O2 * L2)); p['bd'] = nrm(ks[13], (H,))
    p['gd'] = 1.0 + nrm(ks[14], (H,));   p['bed'] = nrm(ks[15], (H,))
    p['md'] = nrm(ks[16], (H,));         p['vd'] = 1.0 + jnp.abs(nrm(ks[17], (H,)))
    # sampling head
    p['ws'] = nrm(ks[18], (2 * LAT, H)); p['bs'] = nrm(ks[19], (2 * LAT,))
    return p


def reference_forward(x_ncw, p, noise):
    """Pure-JAX reference mirroring the PyTorch module (eval mode)."""
    def conv1d(x, w, b):                              # x (B,C,L), w (O,C,K)
        K = w.shape[-1]; Lout = x.shape[-1] - K + 1
        cols = jnp.stack([x[:, :, k:k + Lout] for k in range(K)], axis=-1)
        return jnp.einsum('bclk,ock->bol', cols, w) + b[None, :, None]

    def bn_c(y, g, be, m, v):
        return ((y - m[None, :, None]) / jnp.sqrt(v[None, :, None] + BN_EPS)
                * g[None, :, None] + be[None, :, None])

    h = jnp.maximum(bn_c(conv1d(x_ncw, p['w1'], p['b1']),
                         p['g1'], p['be1'], p['m1'], p['v1']), 0.0)
    h = jnp.maximum(bn_c(conv1d(h, p['w2'], p['b2']),
                         p['g2'], p['be2'], p['m2'], p['v2']), 0.0)
    h = h.reshape(B, -1)                              # torch .view(B, -1)
    h = h @ p['wd'].T + p['bd']
    h = (h - p['md']) / jnp.sqrt(p['vd'] + BN_EPS) * p['gd'] + p['bed']
    h = jnp.maximum(h, 0.0)
    s = jnp.tanh(h @ p['ws'].T + p['bs'])
    z_mean, z_log_var = s[:, :LAT], s[:, LAT:]
    std = jax.nn.softplus(z_log_var) + EPS
    z = z_mean + std * noise
    return z, z_mean, std


if __name__ == "__main__":
    key = jax.random.PRNGKey(0)
    kx, kn, kp = jax.random.split(key, 3)
    # PyTorch Conv1d input layout: (batch, charset_length, max_length) = NCW
    x = jax.random.normal(kx, (B, C0, L0), dtype=jnp.float32)
    # TODO(synk): torch MultivariateNormal.rsample RNG stream is not reproducible;
    # the standard-normal noise is supplied as an explicit deterministic input.
    noise = jax.random.normal(kn, (B, LAT), dtype=jnp.float32)
    params = init_params(kp)
    wblob = prepare_params(params)         # one-time weight prep, off hot path

    z, z_mean, std = jax.block_until_ready(
        moav_encoder_forward(x, noise, wblob))

    z_r, m_r, s_r = reference_forward(x, params, noise)
    assert np.allclose(np.asarray(z), np.asarray(z_r), atol=1e-3, rtol=1e-3)
    assert np.allclose(np.asarray(z_mean), np.asarray(m_r), atol=1e-3, rtol=1e-3)
    assert np.allclose(np.asarray(std), np.asarray(s_r), atol=1e-3, rtol=1e-3)
    print("KERNEL_OK")
</pallas_src>

<mosaic_0001>
module attributes {stable_mosaic.version = 11 : i64} {
  func.func @moav_encoder_kernel(%arg0: i32, %arg1: memref<2x4x16xf32, #tpu.memory_space<vmem>>, %arg2: memref<2x8xf32, #tpu.memory_space<vmem>>, %arg3: memref<184x32xf32, #tpu.memory_space<vmem>>, %arg4: memref<2x24xf32, #tpu.memory_space<vmem>>) attributes {dimension_semantics = [#tpu.dimension_semantics<parallel>], iteration_bounds = array<i64: 1>, scalar_prefetch = 0 : i64, scratch_operands = 0 : i64, tpu.core_type = #tpu.core_type<tc>, window_params = [{transform_indices = @transform_0, window_bounds = array<i64: 2, 4, 16>}, {transform_indices = @transform_1, window_bounds = array<i64: 2, 8>}, {pipeline_mode = #tpu.pipeline_mode<synchronous>, transform_indices = @transform_2, window_bounds = array<i64: 184, 32>}, {transform_indices = @transform_3, window_bounds = array<i64: 2, 24>}]} {
    %c176 = arith.constant 176 : index
    %c0 = arith.constant 0 : index
    %0 = vector.load %arg3[%c176, %c0] : memref<184x32xf32, #tpu.memory_space<vmem>>, vector<8x32xf32>
    %1 = vector.extract_strided_slice %0 {offsets = [0, 0], sizes = [1, 8], strides = [1, 1]} : vector<8x32xf32> to vector<1x8xf32>
    %2 = vector.extract_strided_slice %0 {offsets = [1, 0], sizes = [1, 8], strides = [1, 1]} : vector<8x32xf32> to vector<1x8xf32>
    %3 = vector.extract_strided_slice %0 {offsets = [2, 0], sizes = [1, 8], strides = [1, 1]} : vector<8x32xf32> to vector<1x8xf32>
    %4 = vector.extract_strided_slice %0 {offsets = [3, 0], sizes = [1, 8], strides = [1, 1]} : vector<8x32xf32> to vector<1x8xf32>
    %5 = vector.extract_strided_slice %0 {offsets = [4, 0], sizes = [1, 32], strides = [1, 1]} : vector<8x32xf32> to vector<1x32xf32>
    %6 = vector.extract_strided_slice %0 {offsets = [5, 0], sizes = [1, 32], strides = [1, 1]} : vector<8x32xf32> to vector<1x32xf32>
    %7 = vector.extract_strided_slice %0 {offsets = [6, 0], sizes = [1, 16], strides = [1, 1]} : vector<8x32xf32> to vector<1x16xf32>
    %c0_0 = arith.constant 0 : index
    %c0_1 = arith.constant 0 : index
    %c0_2 = arith.constant 0 : index
    %8 = vector.load %arg1[%c0_0, %c0_1, %c0_2] : memref<2x4x16xf32, #tpu.memory_space<vmem>>, vector<2x4x16xf32>
    %9 = vector.extract_strided_slice %8 {offsets = [0, 0, 0], sizes = [1, 4, 16], strides = [1, 1, 1]} : vector<2x4x16xf32> to vector<1x4x16xf32>
    %10 = vector.shape_cast %9 : vector<1x4x16xf32> to vector<4x16xf32>
    %11 = tpu.transpose %10, [1, 0] : vector<4x16xf32> -> vector<16x4xf32>
    %12 = vector.extract_strided_slice %8 {offsets = [1, 0, 0], sizes = [1, 4, 16], strides = [1, 1, 1]} : vector<2x4x16xf32> to vector<1x4x16xf32>
    %13 = vector.shape_cast %12 : vector<1x4x16xf32> to vector<4x16xf32>
    %14 = tpu.transpose %13, [1, 0] : vector<4x16xf32> -> vector<16x4xf32>
    %cst = arith.constant 0.000000e+00 : f32
    %15 = vector.broadcast %cst : f32 to vector<8x4xf32>
    %16 = tpu.concatenate %11, %14, %15 in 0 : vector<16x4xf32>, vector<16x4xf32>, vector<8x4xf32> -> vector<40x4xf32>
    %17 = vector.extract_strided_slice %16 {offsets = [0, 0], sizes = [32, 4], strides = [1, 1]} : vector<40x4xf32> to vector<32x4xf32>
    %c0_3 = arith.constant 0 : index
    %c0_4 = arith.constant 0 : index
    %18 = vector.load %arg3[%c0_3, %c0_4] : memref<184x32xf32, #tpu.memory_space<vmem>>, vector<4x8xf32>
    %cst_5 = arith.constant dense<0.000000e+00> : vector<32x8xf32>
    %19 = tpu.matmul %17, %18, %cst_5 {dimension_numbers = #tpu.dot_dimension_numbers<[1], [0], [0], [1], [0, 0, 1, 1], [], []>} : vector<32x4xf32>, vector<4x8xf32>, vector<32x8xf32> -> vector<32x8xf32>
    %20 = vector.extract_strided_slice %16 {offsets = [1, 0], sizes = [32, 4], strides = [1, 1]} : vector<40x4xf32> to vector<32x4xf32>
    %c8 = arith.constant 8 : index
    %c0_6 = arith.constant 0 : index
    %21 = vector.load %arg3[%c8, %c0_6] : memref<184x32xf32, #tpu.memory_space<vmem>>, vector<4x8xf32>
    %cst_7 = arith.constant dense<0.000000e+00> : vector<32x8xf32>
    %22 = tpu.matmul %20, %21, %cst_7 {dimension_numbers = #tpu.dot_dimension_numbers<[1], [0], [0], [1], [0, 0, 1, 1], [], []>} : vector<32x4xf32>, vector<4x8xf32>, vector<32x8xf32> -> vector<32x8xf32>
    %23 = arith.addf %19, %22 : vector<32x8xf32>
    %24 = vector.extract_strided_slice %16 {offsets = [2, 0], sizes = [32, 4], strides = [1, 1]} : vector<40x4xf32> to vector<32x4xf32>
    %c16 = arith.constant 16 : index
    %c0_8 = arith.constant 0 : index
    %25 = vector.load %arg3[%c16, %c0_8] : memref<184x32xf32, #tpu.memory_space<vmem>>, vector<4x8xf32>
    %cst_9 = arith.constant dense<0.000000e+00> : vector<32x8xf32>
    %26 = tpu.matmul %24, %25, %cst_9 {dimension_numbers = #tpu.dot_dimension_numbers<[1], [0], [0], [1], [0, 0, 1, 1], [], []>} : vector<32x4xf32>, vector<4x8xf32>, vector<32x8xf32> -> vector<32x8xf32>
    %27 = arith.addf %23, %26 : vector<32x8xf32>
    %28 = vector.extract_strided_slice %16 {offsets = [3, 0], sizes = [32, 4], strides = [1, 1]} : vector<40x4xf32> to vector<32x4xf32>
    %c24 = arith.constant 24 : index
    %c0_10 = arith.constant 0 : index
    %29 = vector.load %arg3[%c24, %c0_10] : memref<184x32xf32, #tpu.memory_space<vmem>>, vector<4x8xf32>
    %cst_11 = arith.constant dense<0.000000e+00> : vector<32x8xf32>
    %30 = tpu.matmul %28, %29, %cst_11 {dimension_numbers = #tpu.dot_dimension_numbers<[1], [0], [0], [1], [0, 0, 1, 1], [], []>} : vector<32x4xf32>, vector<4x8xf32>, vector<32x8xf32> -> vector<32x8xf32>
    %31 = arith.addf %27, %30 : vector<32x8xf32>
    %32 = vector.extract_strided_slice %16 {offsets = [4, 0], sizes = [32, 4], strides = [1, 1]} : vector<40x4xf32> to vector<32x4xf32>
    %c32 = arith.constant 32 : index
    %c0_12 = arith.constant 0 : index
    %33 = vector.load %arg3[%c32, %c0_12] : memref<184x32xf32, #tpu.memory_space<vmem>>, vector<4x8xf32>
    %cst_13 = arith.constant dense<0.000000e+00> : vector<32x8xf32>
    %34 = tpu.matmul %32, %33, %cst_13 {dimension_numbers = #tpu.dot_dimension_numbers<[1], [0], [0], [1], [0, 0, 1, 1], [], []>} : vector<32x4xf32>, vector<4x8xf32>, vector<32x8xf32> -> vector<32x8xf32>
    %35 = arith.addf %31, %34 : vector<32x8xf32>
    %36 = vector.broadcast %1 : vector<1x8xf32> to vector<32x8xf32>
    %37 = arith.mulf %35, %36 : vector<32x8xf32>
    %38 = vector.broadcast %2 : vector<1x8xf32> to vector<32x8xf32>
    %39 = arith.addf %37, %38 : vector<32x8xf32>
    %cst_14 = arith.constant 0.000000e+00 : f32
    %40 = vector.broadcast %cst_14 : f32 to vector<32x8xf32>
    %41 = arith.maximumf %39, %40 : vector<32x8xf32>
    %cst_15 = arith.constant 0.000000e+00 : f32
    %42 = vector.broadcast %cst_15 : f32 to vector<8x8xf32>
    %43 = tpu.concatenate %41, %42 in 0 : vector<32x8xf32>, vector<8x8xf32> -> vector<40x8xf32>
    %44 = vector.extract_strided_slice %43 {offsets = [0, 0], sizes = [32, 8], strides = [1, 1]} : vector<40x8xf32> to vector<32x8xf32>
    %c40 = arith.constant 40 : index
    %c0_16 = arith.constant 0 : index
    %45 = vector.load %arg3[%c40, %c0_16] : memref<184x32xf32, #tpu.memory_space<vmem>>, vector<8x8xf32>
    %cst_17 = arith.constant dense<0.000000e+00> : vector<32x8xf32>
    %46 = tpu.matmul %44, %45, %cst_17 {dimension_numbers = #tpu.dot_dimension_numbers<[1], [0], [0], [1], [0, 0, 1, 1], [], []>} : vector<32x8xf32>, vector<8x8xf32>, vector<32x8xf32> -> vector<32x8xf32>
    %47 = vector.extract_strided_slice %43 {offsets = [1, 0], sizes = [32, 8], strides = [1, 1]} : vector<40x8xf32> to vector<32x8xf32>
    %c48 = arith.constant 48 : index
    %c0_18 = arith.constant 0 : index
    %48 = vector.load %arg3[%c48, %c0_18] : memref<184x32xf32, #tpu.memory_space<vmem>>, vector<8x8xf32>
    %cst_19 = arith.constant dense<0.000000e+00> : vector<32x8xf32>
    %49 = tpu.matmul %47, %48, %cst_19 {dimension_numbers = #tpu.dot_dimension_numbers<[1], [0], [0], [1], [0, 0, 1, 1], [], []>} : vector<32x8xf32>, vector<8x8xf32>, vector<32x8xf32> -> vector<32x8xf32>
    %50 = arith.addf %46, %49 : vector<32x8xf32>
    %51 = vector.extract_strided_slice %43 {offsets = [2, 0], sizes = [32, 8], strides = [1, 1]} : vector<40x8xf32> to vector<32x8xf32>
    %c56 = arith.constant 56 : index
    %c0_20 = arith.constant 0 : index
    %52 = vector.load %arg3[%c56, %c0_20] : memref<184x32xf32, #tpu.memory_space<vmem>>, vector<8x8xf32>
    %cst_21 = arith.constant dense<0.000000e+00> : vector<32x8xf32>
    %53 = tpu.matmul %51, %52, %cst_21 {dimension_numbers = #tpu.dot_dimension_numbers<[1], [0], [0], [1], [0, 0, 1, 1], [], []>} : vector<32x8xf32>, vector<8x8xf32>, vector<32x8xf32> -> vector<32x8xf32>
    %54 = arith.addf %50, %53 : vector<32x8xf32>
    %55 = vector.extract_strided_slice %43 {offsets = [3, 0], sizes = [32, 8], strides = [1, 1]} : vector<40x8xf32> to vector<32x8xf32>
    %c64 = arith.constant 64 : index
    %c0_22 = arith.constant 0 : index
    %56 = vector.load %arg3[%c64, %c0_22] : memref<184x32xf32, #tpu.memory_space<vmem>>, vector<8x8xf32>
    %cst_23 = arith.constant dense<0.000000e+00> : vector<32x8xf32>
    %57 = tpu.matmul %55, %56, %cst_23 {dimension_numbers = #tpu.dot_dimension_numbers<[1], [0], [0], [1], [0, 0, 1, 1], [], []>} : vector<32x8xf32>, vector<8x8xf32>, vector<32x8xf32> -> vector<32x8xf32>
    %58 = arith.addf %54, %57 : vector<32x8xf32>
    %59 = vector.extract_strided_slice %43 {offsets = [4, 0], sizes = [32, 8], strides = [1, 1]} : vector<40x8xf32> to vector<32x8xf32>
    %c72 = arith.constant 72 : index
    %c0_24 = arith.constant 0 : index
    %60 = vector.load %arg3[%c72, %c0_24] : memref<184x32xf32, #tpu.memory_space<vmem>>, vector<8x8xf32>
    %cst_25 = arith.constant dense<0.000000e+00> : vector<32x8xf32>
    %61 = tpu.matmul %59, %60, %cst_25 {dimension_numbers = #tpu.dot_dimension_numbers<[1], [0], [0], [1], [0, 0, 1, 1], [], []>} : vector<32x8xf32>, vector<8x8xf32>, vector<32x8xf32> -> vector<32x8xf32>
    %62 = arith.addf %58, %61 : vector<32x8xf32>
    %63 = vector.broadcast %3 : vector<1x8xf32> to vector<32x8xf32>
    %64 = arith.mulf %62, %63 : vector<32x8xf32>
    %65 = vector.broadcast %4 : vector<1x8xf32> to vector<32x8xf32>
    %66 = arith.addf %64, %65 : vector<32x8xf32>
    %cst_26 = arith.constant 0.000000e+00 : f32
    %67 = vector.broadcast %cst_26 : f32 to vector<32x8xf32>
    %68 = arith.maximumf %66, %67 : vector<32x8xf32>
    %69 = vector.shape_cast %68 : vector<32x8xf32> to vector<2x16x8xf32>
    %70 = vector.extract_strided_slice %69 {offsets = [0, 0, 0], sizes = [2, 1, 8], strides = [1, 1, 1]} : vector<2x16x8xf32> to vector<2x1x8xf32>
    %71 = vector.shape_cast %70 : vector<2x1x8xf32> to vector<2x8xf32>
    %c80 = arith.constant 80 : index
    %c0_27 = arith.constant 0 : index
    %72 = vector.load %arg3[%c80, %c0_27] : memref<184x32xf32, #tpu.memory_space<vmem>>, vector<8x32xf32>
    %cst_28 = arith.constant dense<0.000000e+00> : vector<2x32xf32>
    %73 = tpu.matmul %71, %72, %cst_28 {dimension_numbers = #tpu.dot_dimension_numbers<[1], [0], [0], [1], [0, 0, 1, 1], [], []>} : vector<2x8xf32>, vector<8x32xf32>, vector<2x32xf32> -> vector<2x32xf32>
    %74 = vector.extract_strided_slice %69 {offsets = [0, 1, 0], sizes = [2, 1, 8], strides = [1, 1, 1]} : vector<2x16x8xf32> to vector<2x1x8xf32>
    %75 = vector.shape_cast %74 : vector<2x1x8xf32> to vector<2x8xf32>
    %c88 = arith.constant 88 : index
    %c0_29 = arith.constant 0 : index
    %76 = vector.load %arg3[%c88, %c0_29] : memref<184x32xf32, #tpu.memory_space<vmem>>, vector<8x32xf32>
    %cst_30 = arith.constant dense<0.000000e+00> : vector<2x32xf32>
    %77 = tpu.matmul %75, %76, %cst_30 {dimension_numbers = #tpu.dot_dimension_numbers<[1], [0], [0], [1], [0, 0, 1, 1], [], []>} : vector<2x8xf32>, vector<8x32xf32>, vector<2x32xf32> -> vector<2x32xf32>
    %78 = arith.addf %73, %77 : vector<2x32xf32>
    %79 = vector.extract_strided_slice %69 {offsets = [0, 2, 0], sizes = [2, 1, 8], strides = [1, 1, 1]} : vector<2x16x8xf32> to vector<2x1x8xf32>
    %80 = vector.shape_cast %79 : vector<2x1x8xf32> to vector<2x8xf32>
    %c96 = arith.constant 96 : index
    %c0_31 = arith.constant 0 : index
    %81 = vector.load %arg3[%c96, %c0_31] : memref<184x32xf32, #tpu.memory_space<vmem>>, vector<8x32xf32>
    %cst_32 = arith.constant dense<0.000000e+00> : vector<2x32xf32>
    %82 = tpu.matmul %80, %81, %cst_32 {dimension_numbers = #tpu.dot_dimension_numbers<[1], [0], [0], [1], [0, 0, 1, 1], [], []>} : vector<2x8xf32>, vector<8x32xf32>, vector<2x32xf32> -> vector<2x32xf32>
    %83 = arith.addf %78, %82 : vector<2x32xf32>
    %84 = vector.extract_strided_slice %69 {offsets = [0, 3, 0], sizes = [2, 1, 8], strides = [1, 1, 1]} : vector<2x16x8xf32> to vector<2x1x8xf32>
    %85 = vector.shape_cast %84 : vector<2x1x8xf32> to vector<2x8xf32>
    %c104 = arith.constant 104 : index
    %c0_33 = arith.constant 0 : index
    %86 = vector.load %arg3[%c104, %c0_33] : memref<184x32xf32, #tpu.memory_space<vmem>>, vector<8x32xf32>
    %cst_34 = arith.constant dense<0.000000e+00> : vector<2x32xf32>
    %87 = tpu.matmul %85, %86, %cst_34 {dimension_numbers = #tpu.dot_dimension_numbers<[1], [0], [0], [1], [0, 0, 1, 1], [], []>} : vector<2x8xf32>, vector<8x32xf32>, vector<2x32xf32> -> vector<2x32xf32>
    %88 = arith.addf %83, %87 : vector<2x32xf32>
    %89 = vector.extract_strided_slice %69 {offsets = [0, 4, 0], sizes = [2, 1, 8], strides = [1, 1, 1]} : vector<2x16x8xf32> to vector<2x1x8xf32>
    %90 = vector.shape_cast %89 : vector<2x1x8xf32> to vector<2x8xf32>
    %c112 = arith.constant 112 : index
    %c0_35 = arith.constant 0 : index
    %91 = vector.load %arg3[%c112, %c0_35] : memref<184x32xf32, #tpu.memory_space<vmem>>, vector<8x32xf32>
    %cst_36 = arith.constant dense<0.000000e+00> : vector<2x32xf32>
    %92 = tpu.matmul %90, %91, %cst_36 {dimension_numbers = #tpu.dot_dimension_numbers<[1], [0], [0], [1], [0, 0, 1, 1], [], []>} : vector<2x8xf32>, vector<8x32xf32>, vector<2x32xf32> -> vector<2x32xf32>
    %93 = arith.addf %88, %92 : vector<2x32xf32>
    %94 = vector.extract_strided_slice %69 {offsets = [0, 5, 0], sizes = [2, 1, 8], strides = [1, 1, 1]} : vector<2x16x8xf32> to vector<2x1x8xf32>
    %95 = vector.shape_cast %94 : vector<2x1x8xf32> to vector<2x8xf32>
    %c120 = arith.constant 120 : index
    %c0_37 = arith.constant 0 : index
    %96 = vector.load %arg3[%c120, %c0_37] : memref<184x32xf32, #tpu.memory_space<vmem>>, vector<8x32xf32>
    %cst_38 = arith.constant dense<0.000000e+00> : vector<2x32xf32>
    %97 = tpu.matmul %95, %96, %cst_38 {dimension_numbers = #tpu.dot_dimension_numbers<[1], [0], [0], [1], [0, 0, 1, 1], [], []>} : vector<2x8xf32>, vector<8x32xf32>, vector<2x32xf32> -> vector<2x32xf32>
    %98 = arith.addf %93, %97 : vector<2x32xf32>
    %99 = vector.extract_strided_slice %69 {offsets = [0, 6, 0], sizes = [2, 1, 8], strides = [1, 1, 1]} : vector<2x16x8xf32> to vector<2x1x8xf32>
    %100 = vector.shape_cast %99 : vector<2x1x8xf32> to vector<2x8xf32>
    %c128 = arith.constant 128 : index
    %c0_39 = arith.constant 0 : index
    %101 = vector.load %arg3[%c128, %c0_39] : memref<184x32xf32, #tpu.memory_space<vmem>>, vector<8x32xf32>
    %cst_40 = arith.constant dense<0.000000e+00> : vector<2x32xf32>
    %102 = tpu.matmul %100, %101, %cst_40 {dimension_numbers = #tpu.dot_dimension_numbers<[1], [0], [0], [1], [0, 0, 1, 1], [], []>} : vector<2x8xf32>, vector<8x32xf32>, vector<2x32xf32> -> vector<2x32xf32>
    %103 = arith.addf %98, %102 : vector<2x32xf32>
    %104 = vector.extract_strided_slice %69 {offsets = [0, 7, 0], sizes = [2, 1, 8], strides = [1, 1, 1]} : vector<2x16x8xf32> to vector<2x1x8xf32>
    %105 = vector.shape_cast %104 : vector<2x1x8xf32> to vector<2x8xf32>
    %c136 = arith.constant 136 : index
    %c0_41 = arith.constant 0 : index
    %106 = vector.load %arg3[%c136, %c0_41] : memref<184x32xf32, #tpu.memory_space<vmem>>, vector<8x32xf32>
    %cst_42 = arith.constant dense<0.000000e+00> : vector<2x32xf32>
    %107 = tpu.matmul %105, %106, %cst_42 {dimension_numbers = #tpu.dot_dimension_numbers<[1], [0], [0], [1], [0, 0, 1, 1], [], []>} : vector<2x8xf32>, vector<8x32xf32>, vector<2x32xf32> -> vector<2x32xf32>
    %108 = arith.addf %103, %107 : vector<2x32xf32>
    %109 = vector.broadcast %5 : vector<1x32xf32> to vector<2x32xf32>
    %110 = arith.mulf %108, %109 : vector<2x32xf32>
    %111 = vector.broadcast %6 : vector<1x32xf32> to vector<2x32xf32>
    %112 = arith.addf %110, %111 : vector<2x32xf32>
    %cst_43 = arith.constant 0.000000e+00 : f32
    %113 = vector.broadcast %cst_43 : f32 to vector<2x32xf32>
    %114 = arith.maximumf %112, %113 : vector<2x32xf32>
    %c144 = arith.constant 144 : index
    %c0_44 = arith.constant 0 : index
    %115 = vector.load %arg3[%c144, %c0_44] : memref<184x32xf32, #tpu.memory_space<vmem>>, vector<32x16xf32>
    %cst_45 = arith.constant dense<0.000000e+00> : vector<2x16xf32>
    %116 = tpu.matmul %114, %115, %cst_45 {dimension_numbers = #tpu.dot_dimension_numbers<[1], [0], [0], [1], [0, 0, 1, 1], [], []>} : vector<2x32xf32>, vector<32x16xf32>, vector<2x16xf32> -> vector<2x16xf32>
    %117 = vector.broadcast %7 : vector<1x16xf32> to vector<2x16xf32>
    %118 = arith.addf %116, %117 : vector<2x16xf32>
    %119 = math.tanh %118 : vector<2x16xf32>
    %120 = vector.extract_strided_slice %119 {offsets = [0, 0], sizes = [2, 8], strides = [1, 1]} : vector<2x16xf32> to vector<2x8xf32>
    %121 = vector.extract_strided_slice %119 {offsets = [0, 8], sizes = [2, 8], strides = [1, 1]} : vector<2x16xf32> to vector<2x8xf32>
    %122 = math.exp %121 : vector<2x8xf32>
    %cst_46 = arith.constant 1.000000e+00 : f32
    %123 = vector.broadcast %cst_46 : f32 to vector<2x8xf32>
    %124 = arith.addf %123, %122 : vector<2x8xf32>
    %125 = math.log %124 : vector<2x8xf32>
    %cst_47 = arith.constant 9.99999993E-9 : f32
    %126 = vector.broadcast %cst_47 : f32 to vector<2x8xf32>
    %127 = arith.addf %125, %126 : vector<2x8xf32>
    %c0_48 = arith.constant 0 : index
    %c0_49 = arith.constant 0 : index
    %128 = vector.load %arg2[%c0_48, %c0_49] : memref<2x8xf32, #tpu.memory_space<vmem>>, vector<2x8xf32>
    %129 = arith.mulf %127, %128 : vector<2x8xf32>
    %130 = arith.addf %120, %129 : vector<2x8xf32>
    %c0_50 = arith.constant 0 : index
    %c0_51 = arith.constant 0 : index
    %131 = vector.load %arg4[%c0_50, %c0_51] : memref<2x24xf32, #tpu.memory_space<vmem>>, vector<2x8xf32>
    tpu.vector_store %arg4[%c0_50, %c0_51], %130 {strides = array<i32>} : memref<2x24xf32, #tpu.memory_space<vmem>>, vector<2x8xf32>,
    %c0_52 = arith.constant 0 : index
    %c8_53 = arith.constant 8 : index
    %132 = vector.load %arg4[%c0_52, %c8_53] : memref<2x24xf32, #tpu.memory_space<vmem>>, vector<2x8xf32>
    tpu.vector_store %arg4[%c0_52, %c8_53], %120 {strides = array<i32>} : memref<2x24xf32, #tpu.memory_space<vmem>>, vector<2x8xf32>,
    %c0_54 = arith.constant 0 : index
    %c16_55 = arith.constant 16 : index
    %133 = vector.load %arg4[%c0_54, %c16_55] : memref<2x24xf32, #tpu.memory_space<vmem>>, vector<2x8xf32>
    tpu.vector_store %arg4[%c0_54, %c16_55], %127 {strides = array<i32>} : memref<2x24xf32, #tpu.memory_space<vmem>>, vector<2x8xf32>,
    return
  }
  func.func @transform_0(%arg0: i32) -> (i32, i32, i32) {
    %c0_i32 = arith.constant 0 : i32
    %c0_i32_0 = arith.constant 0 : i32
    %c0_i32_1 = arith.constant 0 : i32
    return %arg0, %c0_i32, %c0_i32_0 : i32, i32, i32
  }
  func.func @transform_1(%arg0: i32) -> (i32, i32) {
    %c0_i32 = arith.constant 0 : i32
    %c0_i32_0 = arith.constant 0 : i32
    return %arg0, %c0_i32 : i32, i32
  }
  func.func @transform_2(%arg0: i32) -> (i32, i32) {
    %c0_i32 = arith.constant 0 : i32
    %c0_i32_0 = arith.constant 0 : i32
    %c0_i32_1 = arith.constant 0 : i32
    return %c0_i32, %c0_i32_0 : i32, i32
  }
  func.func @transform_3(%arg0: i32) -> (i32, i32) {
    %c0_i32 = arith.constant 0 : i32
    %c0_i32_0 = arith.constant 0 : i32
    return %arg0, %c0_i32 : i32, i32
  }
}

</mosaic_0001>

<bundles_post_ra>
// kernel: moav_encoder_forward.1
= control target key start
LH: loop header
LB: loop body
LE: loop exit
PB: predicated region body
PF: predicated region fallthrough
CT: control target
= control target key end

     0   :  { %vm107_vm0 = vcmask 1043456   ;;  %vm88_vm1 = vcmask 1046528   ;;  %vm98_vm2 = vcmask 31744   ;;  %vm293_vm3 = vcmask 1045504   ;;  %s2227_s8 = smov 8   ;;  %s2519_s0 = inlined_call_operand.vmem [shape: f32[2,4,16], index: 0, kind: input, shape index: {}]   ;;  %s2520_s2 = inlined_call_operand.vmem [shape: f32[184,32], index: 2, kind: input, shape index: {}]   ;;  %s2521_s1 = inlined_call_operand.vmem [shape: f32[2,8], index: 1, kind: input, shape index: {}]   ;;  %s2522_s3 = inlined_call_operand.vmem [shape: f32[2,24], index: 3, kind: output, shape index: {}]  }
   0x1   :  { %v15_v0 = vld [vmem:[%s2519_s0] sm:$0xf]  ;;  %v16_v1 = vld [vmem:[%s2519_s0 + $0x4] sm:$0xf]  ;;  %v82_v2 = vld [vmem:[%s2520_s2 + $0x8] sm:$0xf]  ;;  %v624_v50 = vlaneseq }
   0x2   :  { %17 = vxpose.xlu0.b32.start.end [1/1] (short) (narrow) %v15_v0, 16  ;;  %v292_v3 = vld [vmem:[%s2520_s2 + $0x10] sm:$0xf]  ;;  %2030 = vmatprep.subr.msk.mxu1 %vm107_vm0, %v82_v2  ;;  %v403_v4 = vld [vmem:[%s2520_s2 + $0x18] sm:$0xf]  ;;  %v2224_v19 = vmov 0.0  }
   0x3   :  { %2046 = vmatprep.subr.msk.mxu0 %vm107_vm0, %v292_v3  ;;  %2031 = vmatpush3.msk.msra.mxu1 %vm107_vm0, %v82_v2  ;;  %v81_v5 = vld [vmem:[%s2520_s2] sm:$0xf]  ;;  %v2288_v20 = vrot.slane %v2224_v19, 1  ;;  %v2291_v21 = vrot.slane %v2224_v19, 2  ;;  %vm404_vm4 = vcmask 1044480   ;;  %v2319_v36 = vrot.slane %v2224_v19, 3 }
   0x4   :  { %2047 = vmatpush3.msk.msra.mxu0 %vm107_vm0, %v292_v3  ;;  %2038 = vmatprep.subr.msk.mxu1 %vm107_vm0, %v81_v5  ;;  %v514_v22 = vld [vmem:[%s2520_s2 + $0x20] sm:$0xf]  ;;  %v2339_v45 = vrot.slane %v2224_v19, 4  ;;  %v645_v48 = vld [vmem:[%s2520_s2 + $0x30] sm:$0xff]  ;;  %v2353_v49 = vld [vmem:[%s2520_s2 + $0x28] sm:$0xff]  ;;  %v2356_v51 = vshrl.u32 %v624_v50, 7 }
   0x5   :  { %2054 = vmatprep.subr.msk.mxu0 %vm107_vm0, %v403_v4  ;;  %v2362_v56 = vld [vmem:[%s2520_s2 + $0xb0] sm:$0xff]  ;;  %vm658_vm5 = vcmask 64512   ;;  %vm2225_vm6 = vmmov 0   ;;  %vm1166_vm7 = vcmask 1041409   ;;  %vm1795_vm8 = vcmask 261120  }
   0x6   :  { %v626_v54 = vsub.s32 0, %v2356_v51  ;;  %v634_v58 = vsub.s32 1, %v2356_v51  ;;  %vm1887_vm9 = vcmask 58368   ;;  %vm1893_vm10 = vcmask 123968  }
   0x7   :  { %49 = vxpose.xlu0.b32.start.end [1/1] (short) (narrow) %v16_v1, 16  ;;  %vm1899_vm11 = vcmask 189568  }
   0x8   :  { %v627_v59 = vrot.slane %v2362_v56, %v626_v54  ;;  %v635_v62 = vrot.slane %v2362_v56, %v634_v58  ;;  %v943_v54 = vld [vmem:[%s2520_s2 + $0x40] sm:$0xff]  ;;  %v2226_v58 = vmov 0.0|0.0  }
  0x82   :  { %v2273_v6 = vpop.trf.xlu0 }
  0x83   :  { %v89_v8 = vrot.slane %v2273_v6, 1  ;;  %v294_v10 = vrot.slane %v2273_v6, 2  ;;  %v405_v27 = vrot.slane %v2273_v6, 3  ;;  %v515_v39 = vrot.slane %v2273_v6, 4 }
  0x86   :  { %v2275_v7 = vpop.trf.xlu0 }
  0x87   :  { %v90_v9 = vrot.slane %v2275_v7, 1  ;;  %v295_v11 = vrot.slane %v2275_v7, 2  ;;  %v406_v26 = vrot.slane %v2275_v7, 3  ;;  %v516_v37 = vrot.slane %v2275_v7, 4 }
  0x89   :  { %v91_v12 = vsel %vm88_vm1, %v89_v8, %v90_v9  ;;  %v296_v13 = vsel %vm293_vm3, %v294_v10, %v295_v11  ;;  %v407_v33 = vsel %vm404_vm4, %v405_v27, %v406_v26  ;;  %v517_v42 = vsel %vm107_vm0, %v515_v39, %v516_v37 }
  0x8a   :  { %2032 = vmatprep.mubr.msk.f32.mxu1 %vm98_vm2, %v91_v12  ;;  %2048 = vmatprep.mubr.msk.f32.mxu0 %vm98_vm2, %v296_v13  ;;  %v65_v14 = vpop.trf.xlu0 }
  0x8b   :  { %v92_v15 = vrot.slane %v65_v14, 1  ;;  %v297_v16 = vrot.slane %v65_v14, 2  ;;  %v408_v32 = vrot.slane %v65_v14, 3  ;;  %v518_v40 = vrot.slane %v65_v14, 4 }
  0x8d   :  { %v93_v17 = vsel %vm88_vm1, %v90_v9, %v92_v15  ;;  %v298_v18 = vsel %vm293_vm3, %v295_v11, %v297_v16  ;;  %v409_v35 = vsel %vm404_vm4, %v406_v26, %v408_v32  ;;  %v519_v44 = vsel %vm107_vm0, %v516_v37, %v518_v40 }
  0x8e   :  { %2033 = vmatmul.mubr.msk.f32.vlgmr.msra.gmra.mrb[0].mxu1 %vm98_vm2, %v93_v17  ;;  %2049 = vmatmul.mubr.msk.f32.vlgmr.msra.gmra.mrb[0].mxu0 %vm98_vm2, %v298_v18  ;;  %v66_v23 = vpop.trf.xlu0 }
  0x8f   :  { %2055 = vmatpush3.msk.msra.mxu0 %vm107_vm0, %v403_v4  ;;  %v94_v24 = vrot.slane %v66_v23, 1  ;;  %v299_v25 = vrot.slane %v66_v23, 2  ;;  %2039 = vmatpush3.msk.msra.mxu1 %vm107_vm0, %v81_v5  ;;  %v410_v34 = vrot.slane %v66_v23, 3  ;;  %v520_v43 = vrot.slane %v66_v23, 4 }
  0x90   :  { %2062 = vmatprep.subr.msk.mxu0 %vm107_vm0, %v514_v22  ;;  %2070 = vmatprep.subr.mxu1 %v645_v48 }
  0x91   :  { %v95_v28 = vsel %vm88_vm1, %v92_v15, %v94_v24  ;;  %v300_v29 = vsel %vm293_vm3, %v297_v16, %v299_v25  ;;  %v97_v30 = vsel %vm88_vm1, %v94_v24, %v2288_v20  ;;  %v302_v31 = vsel %vm293_vm3, %v299_v25, %v2291_v21 }
  0x92   :  { %2035 = vmatprep.mubr.msk.f32.mxu1 %vm98_vm2, %v95_v28  ;;  %2051 = vmatprep.mubr.msk.f32.mxu0 %vm98_vm2, %v300_v29  ;;  %v411_v38 = vsel %vm404_vm4, %v408_v32, %v410_v34  ;;  %v413_v41 = vsel %vm404_vm4, %v410_v34, %v2319_v36  ;;  %v521_v46 = vsel %vm107_vm0, %v518_v40, %v520_v43 }
  0x93   :  { %2036 = vmatmul.mubr.msk.f32.gmra.mrb[2].mxu1 %vm98_vm2, %v97_v30  ;;  %2052 = vmatmul.mubr.msk.f32.gmra.mrb[2].mxu0 %vm98_vm2, %v302_v31  ;;  %v523_v47 = vsel %vm107_vm0, %v520_v43, %v2339_v45  ;;  %v841_v43 = vld [vmem:[%s2520_s2 + $0x38] sm:$0xff] }
  0x94   :  { %2040 = vmatprep.mubr.msk.f32.mxu1 %vm98_vm2, %v2273_v6  ;;  %2056 = vmatprep.mubr.msk.f32.mxu0 %vm98_vm2, %v407_v33 }
  0x97   :  { %2041 = vmatmul.mubr.msk.f32.vlgmr.msra.gmra.mrb[0].mxu1 %vm98_vm2, %v2275_v7  ;;  %2057 = vmatmul.mubr.msk.f32.vlgmr.msra.gmra.mrb[0].mxu0 %vm98_vm2, %v409_v35 }
  0x98   :  { %2063 = vmatpush3.msk.msra.mxu0 %vm107_vm0, %v514_v22  ;;  %2043 = vmatprep.mubr.msk.f32.mxu1 %vm98_vm2, %v65_v14 }
  0x99   :  { %2059 = vmatprep.mubr.msk.f32.mxu0 %vm98_vm2, %v411_v38  ;;  %2110 = vmatprep.subr.mxu0 %v2224_v19 }
  0x9a   :  { %2071 = vmatpush3.msra.mxu1 %v645_v48 }
  0x9b   :  { %2044 = vmatmul.mubr.msk.f32.gmra.mrb[2].mxu1 %vm98_vm2, %v66_v23  ;;  %2060 = vmatmul.mubr.msk.f32.gmra.mrb[2].mxu0 %vm98_vm2, %v413_v41 }
  0x9c   :  { %2064 = vmatprep.mubr.msk.f32.mxu0 %vm98_vm2, %v517_v42  ;;  %2078 = vmatprep.subr.mxu1 %v2353_v49 }
  0x9f   :  { %2065 = vmatmul.mubr.msk.f32.vlgmr.msra.gmra.mrb[0].mxu0 %vm98_vm2, %v519_v44 }
  0xa0   :  { %2067 = vmatprep.mubr.msk.f32.mxu0 %vm98_vm2, %v521_v46 }
  0xa3   :  { %2068 = vmatmul.mubr.msk.f32.gmra.mrb[2].mxu0 %vm98_vm2, %v523_v47 }
  0xa4   :  { %2112 = vmatprep.mubr.msk.f32.mxu0 %vm2225_vm6, %v2224_v19 }
 0x16a   :  { %v2042_v52 = vpop.f32.mrb[0].mxu1 }
 0x16b   :  { %v273_v53 = vpop.f32.mrb[1].mxu1 }
 0x16e   :  { %v2045_v55 = vpop.f32.mrb[2].mxu1 }
 0x16f   :  { %v283_v57 = vpop.f32.mrb[3].mxu1 }
 0x172   :  { %v2066_v60 = vpop.f32.mrb[0].mxu0 }
 0x173   :  { %v2167_v61 = vadd.f32 %v2066_v60, %v2042_v52  ;;  %v601_v63 = vpop.f32.mrb[1].mxu0  ;;  %v1149_v60 = vsub.s32 2, %v2356_v51 }
 0x174   :  { %v2168_v0 = vadd.f32 %v601_v63, %v273_v53 }
 0x175   :  { %v629_v1 = vmul.f32 %v2167_v61, %v627_v59  ;;  %v1155_v61 = vsub.s32 3, %v2356_v51 }
 0x176   :  { %v628_v2 = vmul.f32 %v2168_v0, %v627_v59  ;;  %v2069_v3 = vpop.f32.mrb[2].mxu0 }
 0x177   :  { %v637_v4 = vadd.f32 %v635_v62, %v629_v1  ;;  %v2169_v5 = vadd.f32 %v2069_v3, %v2045_v55  ;;  %v611_v6 = vpop.f32.mrb[3].mxu0  ;;  %v1156_v0 = vrot.slane %v2362_v56, %v1155_v61 }
 0x178   :  { %v636_v7 = vadd.f32 %v635_v62, %v628_v2  ;;  %v2170_v8 = vadd.f32 %v611_v6, %v283_v57  ;;  %v1162_v57 = vld [vmem:[%s2520_s2 + $0x58] sm:$0xff] }
 0x179   :  { %v641_v9 = vmax.f32 %v637_v4, 0.0  ;;  %v631_v10 = vmul.f32 %v2169_v5, %v627_v59  ;;  %2111 = vmatpush3.msra.mxu0 %v1162_v57 }
 0x17a   :  { %v640_v11 = vmax.f32 %v636_v7, 0.0  ;;  %v630_v12 = vmul.f32 %v2170_v8, %v627_v59  ;;  %2115 = vmatprep.subr.mxu0 %v2224_v19 }
 0x17b   :  { %v639_v13 = vadd.f32 %v635_v62, %v631_v10  ;;  %v651_v14 = vrot.slane %v641_v9, 1  ;;  %v843_v15 = vrot.slane %v641_v9, 2  ;;  %v945_v16 = vrot.slane %v641_v9, 3 }
 0x17c   :  { %v638_v17 = vadd.f32 %v635_v62, %v630_v12  ;;  %v650_v18 = vrot.slane %v640_v11, 1  ;;  %v842_v22 = vrot.slane %v640_v11, 2  ;;  %v944_v23 = vrot.slane %v640_v11, 3 }
 0x17d   :  { %v643_v24 = vmax.f32 %v639_v13, 0.0  ;;  %v1046_v25 = vrot.slane %v640_v11, 4  ;;  %v1047_v26 = vrot.slane %v641_v9, 4  ;;  %v1150_v62 = vrot.slane %v2362_v56, %v1149_v60  ;;  %v1161_v13 = vld [vmem:[%s2520_s2 + $0x50] sm:$0xff] }
 0x17e   :  { %v642_v27 = vmax.f32 %v638_v17, 0.0  ;;  %v652_v28 = vsel %vm88_vm1, %v650_v18, %v651_v14  ;;  %v844_v29 = vsel %vm293_vm3, %v842_v22, %v843_v15  ;;  %v946_v30 = vsel %vm404_vm4, %v944_v23, %v945_v16 }
 0x17f   :  { %2072 = vmatprep.mubr.msk.f32.mxu1 %vm658_vm5, %v652_v28  ;;  %v655_v31 = vrot.slane %v643_v24, 1  ;;  %v847_v32 = vrot.slane %v643_v24, 2  ;;  %v949_v33 = vrot.slane %v643_v24, 3  ;;  %v1048_v34 = vsel %vm107_vm0, %v1046_v25, %v1047_v26 }
 0x180   :  { %v653_v35 = vrot.slane %v642_v27, 1  ;;  %v845_v37 = vrot.slane %v642_v27, 2  ;;  %v947_v38 = vrot.slane %v642_v27, 3  ;;  %v1049_v39 = vrot.slane %v642_v27, 4 }
 0x181   :  { %v1051_v40 = vrot.slane %v643_v24, 4  ;;  %v657_v53 = vsel %vm88_vm1, %v655_v31, %v2288_v20  ;;  %v1045_v20 = vld [vmem:[%s2520_s2 + $0x48] sm:$0xff]  ;;  %v951_v55 = vsel %vm404_vm4, %v949_v33, %v2319_v36  ;;  %v1787_v36 = vld [vmem:[%s2520_s2 + $0x90] sm:$0xff] }
 0x182   :  { %v654_v41 = vsel %vm88_vm1, %v651_v14, %v653_v35  ;;  %v656_v42 = vsel %vm88_vm1, %v653_v35, %v655_v31  ;;  %v846_v44 = vsel %vm293_vm3, %v843_v15, %v845_v37  ;;  %v848_v46 = vsel %vm293_vm3, %v845_v37, %v847_v32  ;;  %v1314_v37 = vld [vmem:[%s2520_s2 + $0x60] sm:$0xff] }
 0x183   :  { %2073 = vmatmul.mubr.msk.f32.vlgmr.msra.gmra.mrb[4].mxu1 %vm658_vm5, %v654_v41  ;;  %v948_v47 = vsel %vm404_vm4, %v945_v16, %v947_v38  ;;  %v950_v48 = vsel %vm404_vm4, %v947_v38, %v949_v33  ;;  %v1050_v50 = vsel %vm107_vm0, %v1047_v26, %v1049_v39  ;;  %v1052_v52 = vsel %vm107_vm0, %v1049_v39, %v1051_v40  ;;  %v1391_v38 = vld [vmem:[%s2520_s2 + $0x68] sm:$0xff]  ;;  %v1468_v39 = vld [vmem:[%s2520_s2 + $0x70] sm:$0xff]  ;;  %v1622_v41 = vld [vmem:[%s2520_s2 + $0x80] sm:$0xff] }
 0x184   :  { %2079 = vmatpush3.msra.mxu1 %v2353_v49  ;;  %2075 = vmatprep.mubr.msk.f32.mxu1 %vm658_vm5, %v656_v42  ;;  %v849_v49 = vsel %vm293_vm3, %v847_v32, %v2291_v21  ;;  %v1053_v21 = vsel %vm107_vm0, %v1051_v40, %v2339_v45  ;;  %v1788_v45 = vld [vmem:[%s2520_s2 + $0x98] sm:$0xff]  ;;  %v1699_v42 = vld [vmem:[%s2520_s2 + $0x88] sm:$0xff] }
 0x185   :  { %2086 = vmatprep.subr.mxu1 %v841_v43  ;;  %v2162_v59 = vpack.c.bf16 %v1788_v45, %v1787_v36  ;;  %v1545_v40 = vld [vmem:[%s2520_s2 + $0x78] sm:$0xff] }
 0x187   :  { %2076 = vmatmul.mubr.msk.f32.gmra.mrb[6].mxu1 %vm658_vm5, %v657_v53 }
 0x188   :  { %2080 = vmatprep.mubr.msk.f32.mxu1 %vm658_vm5, %v640_v11 }
 0x18b   :  { %2081 = vmatmul.mubr.msk.f32.vlgmr.msra.gmra.mrb[4].mxu1 %vm658_vm5, %v641_v9 }
 0x18c   :  { %2087 = vmatpush3.msra.mxu1 %v841_v43  ;;  %2083 = vmatprep.mubr.msk.f32.mxu1 %vm658_vm5, %v642_v27  ;;  %v1789_v43 = vld [vmem:[%s2520_s2 + $0xa0] sm:$0xff] }
 0x18d   :  { %2094 = vmatprep.subr.mxu1 %v943_v54 }
 0x18f   :  { %2084 = vmatmul.mubr.msk.f32.gmra.mrb[6].mxu1 %vm658_vm5, %v643_v24 }
 0x190   :  { %2088 = vmatprep.mubr.msk.f32.mxu1 %vm658_vm5, %v844_v29 }
 0x193   :  { %2089 = vmatmul.mubr.msk.f32.vlgmr.msra.gmra.mrb[4].mxu1 %vm658_vm5, %v846_v44  ;;  %v1790_v44 = vld [vmem:[%s2520_s2 + $0xa8] sm:$0xff] }
 0x194   :  { %2095 = vmatpush3.msra.mxu1 %v943_v54  ;;  %2091 = vmatprep.mubr.msk.f32.mxu1 %vm658_vm5, %v848_v46  ;;  %v2165_v46 = vpack.c.bf16 %v1790_v44, %v1789_v43 }
 0x195   :  { %2102 = vmatprep.subr.mxu1 %v1045_v20 }
 0x197   :  { %2092 = vmatmul.mubr.msk.f32.gmra.mrb[6].mxu1 %vm658_vm5, %v849_v49 }
 0x198   :  { %2096 = vmatprep.mubr.msk.f32.mxu1 %vm658_vm5, %v946_v30 }
 0x19b   :  { %2097 = vmatmul.mubr.msk.f32.vlgmr.msra.gmra.mrb[4].mxu1 %vm658_vm5, %v948_v47  ;;  %v1876_v47 = vld [vmem:[%s2521_s1] sm:$0x3]  ;;  %s2228_s1 = smov 120  }
 0x19c   :  { %2103 = vmatpush3.msra.mxu1 %v1045_v20  ;;  %2099 = vmatprep.mubr.msk.f32.mxu1 %vm658_vm5, %v950_v48  ;;  %v1783_v48 = vsub.s32 5, %v2356_v51 }
 0x19d   :  { %2161 = vmatprep.subr.bf16.mxu1 %v2226_v58  ;;  %1878 = vrot.lane.b32.xlu1 %v1876_v47, %s2227_s8 }
 0x19f   :  { %2100 = vmatmul.mubr.msk.f32.gmra.mrb[6].mxu1 %vm658_vm5, %v951_v55 }
 0x1a0   :  { %2104 = vmatprep.mubr.msk.f32.mxu1 %vm658_vm5, %v1048_v34 }
 0x1a3   :  { %2105 = vmatmul.mubr.msk.f32.vlgmr.msra.gmra.mrb[4].mxu1 %vm658_vm5, %v1050_v50 }
 0x1a4   :  { %2107 = vmatprep.mubr.msk.f32.mxu1 %vm658_vm5, %v1052_v52  ;;  %2163 = vmatpush3.bf16.msra.mxu1 %v2162_v59  ;;  %v1784_v52 = vrot.slane %v2362_v56, %v1783_v48 }
 0x1a5   :  { %2164 = vmatprep.subr.bf16.mxu1 %v2226_v58 }
 0x1a7   :  { %2108 = vmatmul.mubr.msk.f32.gmra.mrb[6].mxu1 %vm658_vm5, %v1053_v21  ;;  %v1793_v21 = vsub.s32 6, %v2356_v51 }
 0x1a8   :  { %2158 = vmatprep.mubr.msk.f32.mxu1 %vm2225_vm6, %v2224_v19  ;;  %2166 = vmatpush3.bf16.msra.mxu1 %v2165_v46 }
 0x1a9   :  { %v1794_v57 = vrot.slane %v2362_v56, %v1793_v21 }
 0x276   :  { %v2106_v63 = vpop.f32.mrb[4].mxu1 }
 0x277   :  { %v1128_v1 = vpop.f32.mrb[5].mxu1 }
 0x278   :  { %v1151_v2 = vmul.f32 %v1150_v62, %v1128_v1  ;;  %v1879_v1 = vpop.permute.xlu1 %1878 }
 0x27a   :  { %v1157_v3 = vadd.f32 %v1156_v0, %v1151_v2  ;;  %v2109_v4 = vpop.f32.mrb[6].mxu1 }
 0x27b   :  { %v1137_v5 = vpop.f32.mrb[7].mxu1 }
 0x27c   :  { %v1159_v6 = vmax.f32 %v1157_v3, 0.0  ;;  %v1152_v7 = vmul.f32 %v1150_v62, %v1137_v5 }
 0x27e   :  { %v1158_v8 = vadd.f32 %v1156_v0, %v1152_v7  ;;  %v1165_v10 = vrot.slane %v1159_v6, 1  ;;  %v1315_v11 = vrot.slane %v1159_v6, 2  ;;  %v1392_v12 = vrot.slane %v1159_v6, 3 }
 0x27f   :  { %v1469_v14 = vrot.slane %v1159_v6, 4  ;;  %v1546_v15 = vrot.slane %v1159_v6, 5  ;;  %v1623_v16 = vrot.slane %v1159_v6, 6  ;;  %v1700_v17 = vrot.slane %v1159_v6, 7 }
 0x280   :  { %v1160_v9 = vmax.f32 %v1158_v8, 0.0 }
 0x282   :  { %v1167_v18 = vsel %vm1166_vm7, %v1160_v9, %v1165_v10  ;;  %v1240_v22 = vrot.slane %v1160_v9, 7  ;;  %v1316_v23 = vrot.slane %v1160_v9, 1  ;;  %v1393_v24 = vrot.slane %v1160_v9, 2 }
 0x283   :  { %2113 = vmatmul.mubr.msk.f32.vlgmr.msra.gmra.mrb[4].mxu0 %vm658_vm5, %v1167_v18  ;;  %v1470_v25 = vrot.slane %v1160_v9, 3  ;;  %v1547_v26 = vrot.slane %v1160_v9, 4  ;;  %v1624_v27 = vrot.slane %v1160_v9, 5  ;;  %v1701_v28 = vrot.slane %v1160_v9, 6 }
 0x284   :  { %2116 = vmatpush3.msra.mxu0 %v1161_v13  ;;  %2117 = vmatprep.mubr.msk.f32.mxu0 %vm2225_vm6, %v2224_v19  ;;  %v1241_v29 = vsel %vm1166_vm7, %v1240_v22, %v1159_v6  ;;  %v1317_v30 = vsel %vm1166_vm7, %v1316_v23, %v1315_v11  ;;  %v1394_v31 = vsel %vm1166_vm7, %v1393_v24, %v1392_v12 }
 0x285   :  { %2120 = vmatprep.subr.mxu0 %v2224_v19  ;;  %v1471_v32 = vsel %vm1166_vm7, %v1470_v25, %v1469_v14  ;;  %v1548_v33 = vsel %vm1166_vm7, %v1547_v26, %v1546_v15  ;;  %v1625_v34 = vsel %vm1166_vm7, %v1624_v27, %v1623_v16  ;;  %v1702_v35 = vsel %vm1166_vm7, %v1701_v28, %v1700_v17 }
 0x28b   :  { %2118 = vmatmul.mubr.msk.f32.vlgmr.msra.gmra.mrb[4].mxu0 %vm658_vm5, %v1241_v29 }
 0x28c   :  { %2121 = vmatpush3.msra.mxu0 %v1314_v37  ;;  %2122 = vmatprep.mubr.msk.f32.mxu0 %vm2225_vm6, %v2224_v19 }
 0x28d   :  { %2125 = vmatprep.subr.mxu0 %v2224_v19 }
 0x293   :  { %2123 = vmatmul.mubr.msk.f32.vlgmr.msra.gmra.mrb[4].mxu0 %vm658_vm5, %v1317_v30 }
 0x294   :  { %2126 = vmatpush3.msra.mxu0 %v1391_v38  ;;  %2127 = vmatprep.mubr.msk.f32.mxu0 %vm2225_vm6, %v2224_v19 }
 0x295   :  { %2130 = vmatprep.subr.mxu0 %v2224_v19 }
 0x29b   :  { %2128 = vmatmul.mubr.msk.f32.vlgmr.msra.gmra.mrb[4].mxu0 %vm658_vm5, %v1394_v31 }
 0x29c   :  { %2131 = vmatpush3.msra.mxu0 %v1468_v39  ;;  %2132 = vmatprep.mubr.msk.f32.mxu0 %vm2225_vm6, %v2224_v19 }
 0x29d   :  { %2135 = vmatprep.subr.mxu0 %v2224_v19 }
 0x2a3   :  { %2133 = vmatmul.mubr.msk.f32.vlgmr.msra.gmra.mrb[4].mxu0 %vm658_vm5, %v1471_v32 }
 0x2a4   :  { %2136 = vmatpush3.msra.mxu0 %v1545_v40  ;;  %2137 = vmatprep.mubr.msk.f32.mxu0 %vm2225_vm6, %v2224_v19 }
 0x2a5   :  { %2140 = vmatprep.subr.mxu0 %v2224_v19 }
 0x2ab   :  { %2138 = vmatmul.mubr.msk.f32.vlgmr.msra.gmra.mrb[4].mxu0 %vm658_vm5, %v1548_v33 }
 0x2ac   :  { %2141 = vmatpush3.msra.mxu0 %v1622_v41  ;;  %2142 = vmatprep.mubr.msk.f32.mxu0 %vm2225_vm6, %v2224_v19 }
 0x2ad   :  { %2145 = vmatprep.subr.mxu0 %v2224_v19 }
 0x2b3   :  { %2143 = vmatmul.mubr.msk.f32.vlgmr.msra.gmra.mrb[4].mxu0 %vm658_vm5, %v1625_v34 }
 0x2b4   :  { %2146 = vmatpush3.msra.mxu0 %v1699_v42  ;;  %2147 = vmatprep.mubr.msk.f32.mxu0 %vm2225_vm6, %v2224_v19  ;;  %v1778_v19 = vsub.s32 4, %v2356_v51 }
 0x2b6   :  { %v1779_v50 = vrot.slane %v2362_v56, %v1778_v19 }
 0x2bb   :  { %2148 = vmatmul.mubr.msk.f32.vlgmr.msra.gmra.mrb[4].mxu0 %vm658_vm5, %v1702_v35 }
 0x38e   :  { %v1771_v53 = vpop.f32.mrb[4].mxu0 }
 0x38f   :  { %v1780_v54 = vmul.f32 %v1779_v50, %v1771_v53  ;;  %v2149_v20 = vpop.f32.mrb[5].mxu0 }
 0x391   :  { %v1785_v49 = vadd.f32 %v1784_v52, %v1780_v54 }
 0x393   :  { %v1786_v55 = vmax.f32 %v1785_v49, 0.0 }
 0x395   :  { %2159 = vmatmul.mubr.msk.f32.vlgmr.msra.gmra.mrb[8].mxu1 %vm1795_vm8, %v1786_v55 }
 0x468   :  { %v1865_v36 = vpop.f32.mrb[8].mxu1 }
 0x469   :  { %v1866_v45 = vadd.f32 %v1865_v36, %v1794_v57  ;;  %v2160_v58 = vpop.f32.mrb[9].mxu1 }
 0x46b   :  { %2218 = vtanh.f32 %v1866_v45 }
 0x475   :  { %v2219_v59 = vpop.eup %2218 }
 0x476   :  { %v1870_v60 = vmul.f32 1.442695, %v2219_v59 }
 0x478   :  { %2220 = vpow2.f32 %v1870_v60 }
 0x482   :  { %v2221_v61 = vpop.eup %2220 }
 0x483   :  { %v1872_v62 = vadd.f32 1.0, %v2221_v61 }
 0x485   :  { %2222 = vlog2.f32 %v1872_v62 }
 0x48f   :  { %v2223_v63 = vpop.eup %2222 }
 0x490   :  { %v1874_v0 = vmul.f32 0.6931472, %v2223_v63 }
 0x492   :  { %v1875_v2 = vadd.f32 1e-08, %v1874_v0 }
 0x494   :  { %v1881_v3 = vmul.f32 %v1879_v1, %v1875_v2  ;;  %1896 = vrot.lane.b32.xlu0 %v1875_v2, %s2227_s8 }
 0x496   :  { %1883 = vrot.lane.b32.xlu1 %v1881_v3, %s2228_s1 }
 0x49a   :  { %1890 = vrot.lane.b32.xlu1 %v2219_v59, %s2227_s8 }
 0x506   :  { %v1897_v5 = vpop.permute.xlu0 %1896 }
 0x508   :  { %v1884_v51 = vpop.permute.xlu1 %1883 }
 0x509   :  { %v1886_v56 = vadd.f32 %v2219_v59, %v1884_v51 }
 0x50b   :  { %1888 = vst.msk [vmem:[%s2522_s3] sm:$0x3] %vm1887_vm9, %v1886_v56 }
 0x50c   :  { %v1891_v4 = vpop.permute.xlu1 %1890 }
 0x50d   :  { %1894 = vst.msk [vmem:[%s2522_s3] sm:$0x3] %vm1893_vm10, %v1891_v4 }
 0x50e   :  { %1900 = vst.msk [vmem:[%s2522_s3] sm:$0x3] %vm1899_vm11, %v1897_v5 }

</bundles_post_ra>
